<compile_context>
chip_gen: v5e
topology: v5e:2x2
jax: 0.10.0
libtpu: 0.0.40
codegen_flags: <defaults>
</compile_context>

<pallas_src>
import jax
import jax.numpy as jnp
from jax.experimental import pallas as pl
from jax.experimental.pallas import tpu as pltpu


LANES = 128
MAX_TILE_ROWS = 8192                 # 4 MiB f32 per input per buffer
MAX_CORE_SPLITS = 2                  # v7x has 2 TCs; harmless (serial) on v5e/v6e
VMEM_LIMIT_BYTES = 32 * 1024 * 1024  # fits v5e/v6e/v7x physical VMEM


def _dice_kernel(nrows_ref, pred_ref, mask_ref, out_ref):
    c = pl.program_id(0)            # core-split index ("parallel")
    i = pl.program_id(1)            # row-block index  ("arbitrary" / reduction)
    steps = pl.num_programs(1)

    @pl.when(i == 0)
    def _init():
        out_ref[...] = jnp.zeros_like(out_ref)

    p = pred_ref[...].astype(jnp.float32)
    m = mask_ref[...].astype(jnp.float32)

    tile_rows = p.shape[0]
    row_start = (c * steps + i) * tile_rows
    nrows = nrows_ref[0]

    def _accumulate(pv, mv):
        # (tile_rows,128) -> (tile_rows//8, 8, 128); the reshape lands exactly
        # on vreg boundaries, and the axis-0 sum is a pure-VALU vreg-add tree.
        out_ref[0] += (pv * mv).reshape(-1, 8, LANES).sum(axis=0)  # sum(p*m)
        out_ref[1] += pv.reshape(-1, 8, LANES).sum(axis=0)         # sum(p)
        out_ref[2] += mv.reshape(-1, 8, LANES).sum(axis=0)         # sum(m)

    # Steady state: block fully in-bounds -> unmasked fast path.
    @pl.when(row_start + tile_rows <= nrows)
    def _steady():
        _accumulate(p, m)

    # Tail (or fully out-of-range clamped block): mask invalid rows via select
    # so boundary-pad / stale data never reaches the accumulator.
    @pl.when(row_start + tile_rows > nrows)
    def _tail():
        row_ids = row_start + jax.lax.broadcasted_iota(
            jnp.int32, (tile_rows, 1), 0)
        valid = row_ids < nrows
        pv = jnp.where(valid, p, 0.0)
        mv = jnp.where(valid, m, 0.0)
        _accumulate(pv, mv)


def _sublane_multiple(dtype):
    size = jnp.dtype(dtype).itemsize
    if size >= 4:
        return 8
    if size == 2:
        return 16
    return 32


def dice_score(pred, mask):
    """Pallas equivalent of DiceScore.forward(pred, mask) -> scalar f32."""
    p = pred.reshape(-1)
    m = mask.reshape(-1)
    n = p.shape[0]

    rows = n // LANES
    rem = n - rows * LANES

    if rows > 0:
        # 128-aligned prefix only; no jnp.pad copy. Remainder handled below.
        p2 = (p if rem == 0 else p[: rows * LANES]).reshape(rows, LANES)
        m2 = (m if rem == 0 else m[: rows * LANES]).reshape(rows, LANES)

        mult = max(_sublane_multiple(p2.dtype), _sublane_multiple(m2.dtype))
        tile_rows = min(MAX_TILE_ROWS, ((rows + mult - 1) // mult) * mult)

        total_blocks = (rows + tile_rows - 1) // tile_rows
        num_splits = max(1, min(MAX_CORE_SPLITS, total_blocks))
        steps_per_core = (total_blocks + num_splits - 1) // num_splits
        last_block = total_blocks - 1

        def in_map(c, i, nrows_ref):
            # Clamp fully-out-of-range blocks (their contribution is masked
            # to zero in the kernel).
            return (jnp.minimum(c * steps_per_core + i, last_block), 0)

        def out_map(c, i, nrows_ref):
            return (c, 0, 0, 0)

        nrows = jnp.array([rows], dtype=jnp.int32)

        out = pl.pallas_call(
            _dice_kernel,
            out_shape=jax.ShapeDtypeStruct((num_splits, 3, 8, LANES),
                                           jnp.float32),
            grid_spec=pltpu.PrefetchScalarGridSpec(
                num_scalar_prefetch=1,
                grid=(num_splits, steps_per_core),
                in_specs=[
                    pl.BlockSpec((tile_rows, LANES), in_map),
                    pl.BlockSpec((tile_rows, LANES), in_map),
                ],
                out_specs=pl.BlockSpec((None, 3, 8, LANES), out_map),
            ),
            compiler_params=pltpu.CompilerParams(
                dimension_semantics=("parallel", "arbitrary"),
                vmem_limit_bytes=VMEM_LIMIT_BYTES,
            ),
        )(nrows, p2, m2)

        # Combine per-core vreg-sized partials (tiny XLA reduction).
        partials = jnp.sum(out, axis=(0, 2, 3))          # (3,)
    else:
        partials = jnp.zeros((3,), jnp.float32)

    if rem:
        # <=127-element remainder: three scalar sums in the wrapper.
        pt = p[rows * LANES:].astype(jnp.float32)
        mt = m[rows * LANES:].astype(jnp.float32)
        partials = partials + jnp.stack(
            [jnp.sum(pt * mt), jnp.sum(pt), jnp.sum(mt)])

    return 2.0 * partials[0] / (partials[1] + partials[2] + 1e-08)


def _reference(pred, mask):
    pf = pred.reshape(-1).astype(jnp.float32)
    mf = mask.reshape(-1).astype(jnp.float32)
    return 2.0 * jnp.sum(pf * mf) / (jnp.sum(pf) + jnp.sum(mf) + 1e-08)


if __name__ == "__main__":
    key = jax.random.PRNGKey(0)
    k1, k2, k3, k4 = jax.random.split(key, 4)

    # Primary check: NCHW-style sigmoid "predictions" and a binary mask.
    pred = jax.nn.sigmoid(jax.random.normal(k1, (2, 4, 16, 16),
                                            dtype=jnp.float32))
    mask = (jax.random.uniform(k2, (2, 4, 16, 16)) > 0.5).astype(jnp.float32)

    dice = dice_score(pred, mask)
    jax.block_until_ready(dice)
    ref = _reference(pred, mask)
    assert jnp.allclose(dice, ref, rtol=1e-5, atol=1e-6), (dice, ref)

    # Secondary check: flat size not a multiple of 128 (exercises the in-kernel
    # row-tail mask and the wrapper-side remainder path).
    pred2 = jax.nn.sigmoid(jax.random.normal(k3, (5, 270), dtype=jnp.float32))
    mask2 = (jax.random.uniform(k4, (5, 270)) > 0.5).astype(jnp.float32)
    dice2 = dice_score(pred2, mask2)
    jax.block_until_ready(dice2)
    ref2 = _reference(pred2, mask2)
    assert jnp.allclose(dice2, ref2, rtol=1e-5, atol=1e-6), (dice2, ref2)

    print("KERNEL_OK")
</pallas_src>

<mosaic_0001>
module attributes {stable_mosaic.version = 11 : i64} {
  func.func @_dice_kernel(%arg0: i32, %arg1: i32, %arg2: memref<1xi32, #tpu.memory_space<smem>>, %arg3: memref<16x128xf32, #tpu.memory_space<vmem>>, %arg4: memref<16x128xf32, #tpu.memory_space<vmem>>, %arg5: memref<1x3x8x128xf32, #tpu.memory_space<vmem>>) attributes {dimension_semantics = [#tpu.dimension_semantics<parallel>, #tpu.dimension_semantics<arbitrary>], iteration_bounds = array<i64: 1, 1>, scalar_prefetch = 1 : i64, scratch_operands = 0 : i64, tpu.core_type = #tpu.core_type<tc>, window_params = [{transform_indices = @transform_0, window_bounds = array<i64: 16, 128>}, {transform_indices = @transform_1, window_bounds = array<i64: 16, 128>}, {transform_indices = @transform_2, window_bounds = array<i64: 1, 3, 8, 128>}]} {
    %c0_i32 = arith.constant 0 : i32
    %0 = arith.cmpi eq, %arg1, %c0_i32 : i32
    %1 = arith.extui %0 : i1 to i32
    %c0_i32_0 = arith.constant 0 : i32
    %2 = arith.cmpi ne, %1, %c0_i32_0 : i32
    scf.if %2 {
      %cst = arith.constant 0.000000e+00 : f32
      %17 = vector.broadcast %cst : f32 to vector<3x8x128xf32>
      %c0_9 = arith.constant 0 : index
      %c0_10 = arith.constant 0 : index
      %c0_11 = arith.constant 0 : index
      %c0_12 = arith.constant 0 : index
      %18 = vector.load %arg5[%c0_9, %c0_10, %c0_11, %c0_12] : memref<1x3x8x128xf32, #tpu.memory_space<vmem>>, vector<1x3x8x128xf32>
      %19 = vector.shape_cast %18 : vector<1x3x8x128xf32> to vector<3x8x128xf32>
      %20 = vector.shape_cast %17 : vector<3x8x128xf32> to vector<1x3x8x128xf32>
      tpu.vector_store %arg5[%c0_9, %c0_10, %c0_11, %c0_12], %20 {strides = array<i32>} : memref<1x3x8x128xf32, #tpu.memory_space<vmem>>, vector<1x3x8x128xf32>,
    } else {
    }
    %c0 = arith.constant 0 : index
    %c0_1 = arith.constant 0 : index
    %3 = vector.load %arg3[%c0, %c0_1] : memref<16x128xf32, #tpu.memory_space<vmem>>, vector<16x128xf32>
    %c0_2 = arith.constant 0 : index
    %c0_3 = arith.constant 0 : index
    %4 = vector.load %arg4[%c0_2, %c0_3] : memref<16x128xf32, #tpu.memory_space<vmem>>, vector<16x128xf32>
    %c1_i32 = arith.constant 1 : i32
    %5 = arith.muli %arg0, %c1_i32 : i32
    %6 = arith.addi %5, %arg1 : i32
    %c16_i32 = arith.constant 16 : i32
    %7 = arith.muli %6, %c16_i32 : i32
    %c0_4 = arith.constant 0 : index
    %8 = memref.load %arg2[%c0_4] : memref<1xi32, #tpu.memory_space<smem>>
    %c16_i32_5 = arith.constant 16 : i32
    %9 = arith.addi %7, %c16_i32_5 : i32
    %10 = arith.cmpi sle, %9, %8 : i32
    %11 = arith.extui %10 : i1 to i32
    %c0_i32_6 = arith.constant 0 : i32
    %12 = arith.cmpi ne, %11, %c0_i32_6 : i32
    scf.if %12 {
      %c0_9 = arith.constant 0 : index
      %c0_10 = arith.constant 0 : index
      %c0_11 = arith.constant 0 : index
      %c0_12 = arith.constant 0 : index
      %17 = vector.load %arg5[%c0_9, %c0_10, %c0_11, %c0_12] : memref<1x3x8x128xf32, #tpu.memory_space<vmem>>, vector<1x1x8x128xf32>
      %18 = vector.shape_cast %17 : vector<1x1x8x128xf32> to vector<8x128xf32>
      %19 = arith.mulf %3, %4 : vector<16x128xf32>
      %20 = vector.shape_cast %19 : vector<16x128xf32> to vector<2x8x128xf32>
      %cst = arith.constant dense<0.000000e+00> : vector<8x128xf32>
      %21 = vector.multi_reduction <add>, %20, %cst [0] : vector<2x8x128xf32> to vector<8x128xf32>
      %22 = arith.addf %18, %21 : vector<8x128xf32>
      %c0_13 = arith.constant 0 : index
      %c0_14 = arith.constant 0 : index
      %c0_15 = arith.constant 0 : index
      %c0_16 = arith.constant 0 : index
      %23 = vector.load %arg5[%c0_13, %c0_14, %c0_15, %c0_16] : memref<1x3x8x128xf32, #tpu.memory_space<vmem>>, vector<1x1x8x128xf32>
      %24 = vector.shape_cast %23 : vector<1x1x8x128xf32> to vector<8x128xf32>
      %25 = vector.shape_cast %22 : vector<8x128xf32> to vector<1x1x8x128xf32>
      tpu.vector_store %arg5[%c0_13, %c0_14, %c0_15, %c0_16], %25 {strides = array<i32>} : memref<1x3x8x128xf32, #tpu.memory_space<vmem>>, vector<1x1x8x128xf32>,
      %c0_17 = arith.constant 0 : index
      %c1 = arith.constant 1 : index
      %c0_18 = arith.constant 0 : index
      %c0_19 = arith.constant 0 : index
      %26 = vector.load %arg5[%c0_17, %c1, %c0_18, %c0_19] : memref<1x3x8x128xf32, #tpu.memory_space<vmem>>, vector<1x1x8x128xf32>
      %27 = vector.shape_cast %26 : vector<1x1x8x128xf32> to vector<8x128xf32>
      %28 = vector.shape_cast %3 : vector<16x128xf32> to vector<2x8x128xf32>
      %cst_20 = arith.constant dense<0.000000e+00> : vector<8x128xf32>
      %29 = vector.multi_reduction <add>, %28, %cst_20 [0] : vector<2x8x128xf32> to vector<8x128xf32>
      %30 = arith.addf %27, %29 : vector<8x128xf32>
      %c0_21 = arith.constant 0 : index
      %c1_22 = arith.constant 1 : index
      %c0_23 = arith.constant 0 : index
      %c0_24 = arith.constant 0 : index
      %31 = vector.load %arg5[%c0_21, %c1_22, %c0_23, %c0_24] : memref<1x3x8x128xf32, #tpu.memory_space<vmem>>, vector<1x1x8x128xf32>
      %32 = vector.shape_cast %31 : vector<1x1x8x128xf32> to vector<8x128xf32>
      %33 = vector.shape_cast %30 : vector<8x128xf32> to vector<1x1x8x128xf32>
      tpu.vector_store %arg5[%c0_21, %c1_22, %c0_23, %c0_24], %33 {strides = array<i32>} : memref<1x3x8x128xf32, #tpu.memory_space<vmem>>, vector<1x1x8x128xf32>,
      %c0_25 = arith.constant 0 : index
      %c2 = arith.constant 2 : index
      %c0_26 = arith.constant 0 : index
      %c0_27 = arith.constant 0 : index
      %34 = vector.load %arg5[%c0_25, %c2, %c0_26, %c0_27] : memref<1x3x8x128xf32, #tpu.memory_space<vmem>>, vector<1x1x8x128xf32>
      %35 = vector.shape_cast %34 : vector<1x1x8x128xf32> to vector<8x128xf32>
      %36 = vector.shape_cast %4 : vector<16x128xf32> to vector<2x8x128xf32>
      %cst_28 = arith.constant dense<0.000000e+00> : vector<8x128xf32>
      %37 = vector.multi_reduction <add>, %36, %cst_28 [0] : vector<2x8x128xf32> to vector<8x128xf32>
      %38 = arith.addf %35, %37 : vector<8x128xf32>
      %c0_29 = arith.constant 0 : index
      %c2_30 = arith.constant 2 : index
      %c0_31 = arith.constant 0 : index
      %c0_32 = arith.constant 0 : index
      %39 = vector.load %arg5[%c0_29, %c2_30, %c0_31, %c0_32] : memref<1x3x8x128xf32, #tpu.memory_space<vmem>>, vector<1x1x8x128xf32>
      %40 = vector.shape_cast %39 : vector<1x1x8x128xf32> to vector<8x128xf32>
      %41 = vector.shape_cast %38 : vector<8x128xf32> to vector<1x1x8x128xf32>
      tpu.vector_store %arg5[%c0_29, %c2_30, %c0_31, %c0_32], %41 {strides = array<i32>} : memref<1x3x8x128xf32, #tpu.memory_space<vmem>>, vector<1x1x8x128xf32>,
    } else {
    }
    %c16_i32_7 = arith.constant 16 : i32
    %13 = arith.addi %7, %c16_i32_7 : i32
    %14 = arith.cmpi sgt, %13, %8 : i32
    %15 = arith.extui %14 : i1 to i32
    %c0_i32_8 = arith.constant 0 : i32
    %16 = arith.cmpi ne, %15, %c0_i32_8 : i32
    scf.if %16 {
      %17 = tpu.iota {dimensions = array<i32: 0>} : vector<16x1xi32>
      %18 = vector.broadcast %7 : i32 to vector<16x1xi32>
      %19 = arith.addi %18, %17 : vector<16x1xi32>
      %20 = vector.broadcast %8 : i32 to vector<16x1xi32>
      %21 = arith.cmpi slt, %19, %20 : vector<16x1xi32>
      %cst = arith.constant 0.000000e+00 : f32
      %22 = vector.shape_cast %21 : vector<16x1xi1> to vector<16x1xi1>
      %23 = vector.broadcast %22 : vector<16x1xi1> to vector<16x128xi1>
      %24 = vector.broadcast %cst : f32 to vector<16x128xf32>
      %25 = arith.select %23, %3, %24 : vector<16x128xi1>, vector<16x128xf32>
      %cst_9 = arith.constant 0.000000e+00 : f32
      %26 = vector.shape_cast %21 : vector<16x1xi1> to vector<16x1xi1>
      %27 = vector.broadcast %26 : vector<16x1xi1> to vector<16x128xi1>
      %28 = vector.broadcast %cst_9 : f32 to vector<16x128xf32>
      %29 = arith.select %27, %4, %28 : vector<16x128xi1>, vector<16x128xf32>
      %c0_10 = arith.constant 0 : index
      %c0_11 = arith.constant 0 : index
      %c0_12 = arith.constant 0 : index
      %c0_13 = arith.constant 0 : index
      %30 = vector.load %arg5[%c0_10, %c0_11, %c0_12, %c0_13] : memref<1x3x8x128xf32, #tpu.memory_space<vmem>>, vector<1x1x8x128xf32>
      %31 = vector.shape_cast %30 : vector<1x1x8x128xf32> to vector<8x128xf32>
      %32 = arith.mulf %25, %29 : vector<16x128xf32>
      %33 = vector.shape_cast %32 : vector<16x128xf32> to vector<2x8x128xf32>
      %cst_14 = arith.constant dense<0.000000e+00> : vector<8x128xf32>
      %34 = vector.multi_reduction <add>, %33, %cst_14 [0] : vector<2x8x128xf32> to vector<8x128xf32>
      %35 = arith.addf %31, %34 : vector<8x128xf32>
      %c0_15 = arith.constant 0 : index
      %c0_16 = arith.constant 0 : index
      %c0_17 = arith.constant 0 : index
      %c0_18 = arith.constant 0 : index
      %36 = vector.load %arg5[%c0_15, %c0_16, %c0_17, %c0_18] : memref<1x3x8x128xf32, #tpu.memory_space<vmem>>, vector<1x1x8x128xf32>
      %37 = vector.shape_cast %36 : vector<1x1x8x128xf32> to vector<8x128xf32>
      %38 = vector.shape_cast %35 : vector<8x128xf32> to vector<1x1x8x128xf32>
      tpu.vector_store %arg5[%c0_15, %c0_16, %c0_17, %c0_18], %38 {strides = array<i32>} : memref<1x3x8x128xf32, #tpu.memory_space<vmem>>, vector<1x1x8x128xf32>,
      %c0_19 = arith.constant 0 : index
      %c1 = arith.constant 1 : index
      %c0_20 = arith.constant 0 : index
      %c0_21 = arith.constant 0 : index
      %39 = vector.load %arg5[%c0_19, %c1, %c0_20, %c0_21] : memref<1x3x8x128xf32, #tpu.memory_space<vmem>>, vector<1x1x8x128xf32>
      %40 = vector.shape_cast %39 : vector<1x1x8x128xf32> to vector<8x128xf32>
      %41 = vector.shape_cast %25 : vector<16x128xf32> to vector<2x8x128xf32>
      %cst_22 = arith.constant dense<0.000000e+00> : vector<8x128xf32>
      %42 = vector.multi_reduction <add>, %41, %cst_22 [0] : vector<2x8x128xf32> to vector<8x128xf32>
      %43 = arith.addf %40, %42 : vector<8x128xf32>
      %c0_23 = arith.constant 0 : index
      %c1_24 = arith.constant 1 : index
      %c0_25 = arith.constant 0 : index
      %c0_26 = arith.constant 0 : index
      %44 = vector.load %arg5[%c0_23, %c1_24, %c0_25, %c0_26] : memref<1x3x8x128xf32, #tpu.memory_space<vmem>>, vector<1x1x8x128xf32>
      %45 = vector.shape_cast %44 : vector<1x1x8x128xf32> to vector<8x128xf32>
      %46 = vector.shape_cast %43 : vector<8x128xf32> to vector<1x1x8x128xf32>
      tpu.vector_store %arg5[%c0_23, %c1_24, %c0_25, %c0_26], %46 {strides = array<i32>} : memref<1x3x8x128xf32, #tpu.memory_space<vmem>>, vector<1x1x8x128xf32>,
      %c0_27 = arith.constant 0 : index
      %c2 = arith.constant 2 : index
      %c0_28 = arith.constant 0 : index
      %c0_29 = arith.constant 0 : index
      %47 = vector.load %arg5[%c0_27, %c2, %c0_28, %c0_29] : memref<1x3x8x128xf32, #tpu.memory_space<vmem>>, vector<1x1x8x128xf32>
      %48 = vector.shape_cast %47 : vector<1x1x8x128xf32> to vector<8x128xf32>
      %49 = vector.shape_cast %29 : vector<16x128xf32> to vector<2x8x128xf32>
      %cst_30 = arith.constant dense<0.000000e+00> : vector<8x128xf32>
      %50 = vector.multi_reduction <add>, %49, %cst_30 [0] : vector<2x8x128xf32> to vector<8x128xf32>
      %51 = arith.addf %48, %50 : vector<8x128xf32>
      %c0_31 = arith.constant 0 : index
      %c2_32 = arith.constant 2 : index
      %c0_33 = arith.constant 0 : index
      %c0_34 = arith.constant 0 : index
      %52 = vector.load %arg5[%c0_31, %c2_32, %c0_33, %c0_34] : memref<1x3x8x128xf32, #tpu.memory_space<vmem>>, vector<1x1x8x128xf32>
      %53 = vector.shape_cast %52 : vector<1x1x8x128xf32> to vector<8x128xf32>
      %54 = vector.shape_cast %51 : vector<8x128xf32> to vector<1x1x8x128xf32>
      tpu.vector_store %arg5[%c0_31, %c2_32, %c0_33, %c0_34], %54 {strides = array<i32>} : memref<1x3x8x128xf32, #tpu.memory_space<vmem>>, vector<1x1x8x128xf32>,
    } else {
    }
    return
  }
  func.func @transform_0(%arg0: i32, %arg1: i32, %arg2: memref<1xi32, #tpu.memory_space<smem>>) -> (i32, i32) {
    %c1_i32 = arith.constant 1 : i32
    %0 = arith.muli %arg0, %c1_i32 : i32
    %1 = arith.addi %0, %arg1 : i32
    %c0_i32 = arith.constant 0 : i32
    %2 = arith.minsi %1, %c0_i32 : i32
    %c0_i32_0 = arith.constant 0 : i32
    %c0_i32_1 = arith.constant 0 : i32
    return %2, %c0_i32_0 : i32, i32
  }
  func.func @transform_1(%arg0: i32, %arg1: i32, %arg2: memref<1xi32, #tpu.memory_space<smem>>) -> (i32, i32) {
    %c1_i32 = arith.constant 1 : i32
    %0 = arith.muli %arg0, %c1_i32 : i32
    %1 = arith.addi %0, %arg1 : i32
    %c0_i32 = arith.constant 0 : i32
    %2 = arith.minsi %1, %c0_i32 : i32
    %c0_i32_0 = arith.constant 0 : i32
    %c0_i32_1 = arith.constant 0 : i32
    return %2, %c0_i32_0 : i32, i32
  }
  func.func @transform_2(%arg0: i32, %arg1: i32, %arg2: memref<1xi32, #tpu.memory_space<smem>>) -> (i32, i32, i32, i32) {
    %c0_i32 = arith.constant 0 : i32
    %c0_i32_0 = arith.constant 0 : i32
    %c0_i32_1 = arith.constant 0 : i32
    %c0_i32_2 = arith.constant 0 : i32
    return %arg0, %c0_i32, %c0_i32_0, %c0_i32_1 : i32, i32, i32, i32
  }
}

</mosaic_0001>

<bundles_post_ra>
// kernel: tpu_custom_call.1
= control target key start
LH: loop header
LB: loop body
LE: loop exit
PB: predicated region body
PF: predicated region fallthrough
CT: control target
= control target key end

     0   :  { %9 = vsyncpa [#allocation5], 0  ;;  %s303_s0 = inlined_call_operand.<no memory space> [shape: s32[1], index: 0, kind: input, shape index: {}]   ;;  %s304_s1 = inlined_call_operand.hbm [shape: f32[16,128], index: 1, kind: input, shape index: {}]   ;;  %s305_s2 = inlined_call_operand.hbm [shape: f32[16,128], index: 2, kind: input, shape index: {}]   ;;  %s306_s3 = inlined_call_operand.hbm [shape: f32[1,3,8,128], index: 3, kind: output, shape index: {}]  }
   0x1   :  { %10 = vsyncpa [#allocation8], 0 }
   0x2   :  { %11 = vsyncpa [#allocation6], 0  ;;  %s22_s14 = sshll.u32 %s304_s1, 4  ;;  %s250_s15 = smov [#allocation4]   ;;  %s23_s14 = int_to_ptr.hbm [resolvable:$true] %s22_s14 }
   0x3   :  { %s24_s16 = sshll.u32 %s250_s15, 4  ;;  %s41_s19 = sshll.u32 %s305_s2, 4  ;;  %s25_s16 = int_to_ptr.vmem [resolvable:$true] %s24_s16  ;;  %s42_s19 = int_to_ptr.hbm [resolvable:$true] %s41_s19 }
   0x4   :  { %s251_s20 = smov 128   ;;  %s252_s21 = smov 8  }
   0x5   :  { %30 = dma.hbm_to_vmem [thread:$0]  %s23_s14, 256, %s25_s16, [#allocation5], %s251_s20, %s251_s20, %s252_s21  }
   0x6   :  { %s253_s22 = smov [#allocation7]  }
   0x7   :  { %s43_s23 = sshll.u32 %s253_s22, 4  ;;  %s44_s23 = int_to_ptr.vmem [resolvable:$true] %s43_s23 }
   0x8   :  { %49 = dma.hbm_to_vmem [thread:$0]  %s42_s19, 256, %s44_s23, [#allocation8], %s251_s20, %s251_s20, %s252_s21  }
   0x9   :  { %244 = dma.done.wait [#allocation5], 256  }
   0xa   :  { %245 = vsyncadd [#allocation5], 4294967040 }
   0xb   :  { %246 = dma.done.wait [#allocation8], 256  }
   0xc   :  { %247 = vsyncadd [#allocation8], 4294967040  ;;  %v254_v0 = vmov 0.0   ;;  %v73_v1 = vld [vmem:[#allocation4] sm:$0xff]  ;;  %v74_v2 = vld [vmem:[#allocation4 + $0x8] sm:$0xff]  ;;  %p163_p0 = scmp.lt.s32.totalorder %s303_s0, 16 }
   0xd   :  { %70 = vst [vmem:[#allocation9] sm:$0xff] %v254_v0  ;;  %v75_v3 = vld [vmem:[#allocation7] sm:$0xff]  ;;  %v76_v4 = vld [vmem:[#allocation7 + $0x8] sm:$0xff] }
   0xe   :  { %71 = vst [vmem:[#allocation9 + $0x8] sm:$0xff] %v254_v0  ;;  %84 = sbr.rel (%p163_p0) target bundleno = 27 (0x1b), region = 25 }
   0xf   :  { %72 = vst [vmem:[#allocation9 + $0x10] sm:$0xff] %v254_v0 }
  0x13   :  { %v86_v5 = vmul.f32 %v75_v3, %v73_v1  ;;  %v87_v6 = vmul.f32 %v76_v4, %v74_v2  ;;  %v93_v8 = vadd.f32 %v74_v2, %v73_v1  ;;  %v98_v10 = vadd.f32 %v76_v4, %v75_v3 }
  0x14   :  { %v85_v11 = vld [vmem:[#allocation9] sm:$0xff] }
  0x15   :  { %v92_v7 = vld [vmem:[#allocation9 + $0x8] sm:$0xff]  ;;  %v88_v12 = vadd.f32 %v87_v6, %v86_v5 }
  0x16   :  { %v97_v9 = vld [vmem:[#allocation9 + $0x10] sm:$0xff]  ;;  %v94_v13 = vadd.f32 %v93_v8, %v92_v7 }
  0x17   :  { %v99_v14 = vadd.f32 %v98_v10, %v97_v9  ;;  %v89_v15 = vadd.f32 %v88_v12, %v85_v11 }
  0x18   :  { %95 = vst [vmem:[#allocation9 + $0x8] sm:$0xff] %v94_v13 }
  0x19   :  { %100 = vst [vmem:[#allocation9 + $0x10] sm:$0xff] %v99_v14 }
  0x1a   :  { %90 = vst [vmem:[#allocation9] sm:$0xff] %v89_v15 }
  0x1b PF:  { %p165_p1 = scmp.ge.s32.totalorder %s303_s0, 16 }
  0x1d   :  { %104 = sbr.rel (%p165_p1) target bundleno = 49 (0x31), region = 29 }
  0x22   :  { %v105_v16 = vlaneseq  ;;  %v111_v17 = vstv %s303_s0  ;;  %v129_v25 = vld [vmem:[#allocation9 + $0x8] sm:$0xff]  ;;  %v134_v26 = vld [vmem:[#allocation9 + $0x10] sm:$0xff]  ;;  %v122_v30 = vld [vmem:[#allocation9] sm:$0xff] }
  0x24   :  { %v106_v18 = vshrl.u32 %v105_v16, 7 }
  0x26   :  { %v107_v19 = vadd.s32 8, %v106_v18  ;;  %vm112_vm0 = vcmp.lt.s32.totalorder %v106_v18, %v111_v17 }
  0x27   :  { %v118_v20 = vsel %vm112_vm0, %v73_v1, 0.0  ;;  %v120_v21 = vsel %vm112_vm0, %v75_v3, 0.0 }
  0x28   :  { %vm113_vm1 = vcmp.lt.s32.totalorder %v107_v19, %v111_v17  ;;  %v123_v22 = vmul.f32 %v120_v21, %v118_v20 }
  0x29   :  { %v119_v23 = vsel %vm113_vm1, %v74_v2, 0.0  ;;  %v121_v24 = vsel %vm113_vm1, %v76_v4, 0.0 }
  0x2a   :  { %v124_v27 = vmul.f32 %v121_v24, %v119_v23  ;;  %v130_v28 = vadd.f32 %v119_v23, %v118_v20  ;;  %v135_v29 = vadd.f32 %v121_v24, %v120_v21 }
  0x2c   :  { %v125_v31 = vadd.f32 %v124_v27, %v123_v22  ;;  %v131_v32 = vadd.f32 %v130_v28, %v129_v25  ;;  %v136_v33 = vadd.f32 %v135_v29, %v134_v26 }
  0x2e   :  { %v126_v34 = vadd.f32 %v125_v31, %v122_v30  ;;  %132 = vst [vmem:[#allocation9 + $0x8] sm:$0xff] %v131_v32 }
  0x2f   :  { %137 = vst [vmem:[#allocation9 + $0x10] sm:$0xff] %v136_v33 }
  0x30   :  { %127 = vst [vmem:[#allocation9] sm:$0xff] %v126_v34 }
  0x31 PF:  { %s144_s29 = sshll.u32 %s306_s3, 4  ;;  %s255_s30 = smov [#allocation9]   ;;  %s145_s29 = int_to_ptr.hbm [resolvable:$true] %s144_s29 }
  0x32   :  { %s142_s4 = sshll.u32 %s255_s30, 4  ;;  %s143_s4 = int_to_ptr.vmem [resolvable:$true] %s142_s4 }
  0x33   :  { %150 = dma.vmem_to_hbm [thread:$0]  %s143_s4, 384, %s145_s29, [#allocation6], %s251_s20, %s251_s20, %s252_s21  }
  0x34   :  { %248 = dma.done.wait [#allocation6], 384  }
  0x35   :  { %249 = vsyncadd [#allocation6], 4294966912 }
  0x36   :  { %155 = vsyncpa [#allocation5], 1 }
  0x37   :  { %156 = vsyncpa [#allocation8], 1 }
  0x38   :  { %157 = vsyncpa [#allocation6], 1 }

</bundles_post_ra>
